<compile_context>
chip_gen: v7x
topology: tpu7x:2x2x1
jax: 0.10.0
libtpu: 0.0.40
codegen_flags: <defaults>
</compile_context>

<pallas_src>
import jax
import jax.numpy as jnp
from jax import lax
from jax.experimental import pallas as pl
from jax.experimental.pallas import tpu as pltpu


# --------------------------------------------------------------------------
# small helpers
# --------------------------------------------------------------------------
def _round_up(v, m):
    return ((v + m - 1) // m) * m


def _vmem_capacity_bytes():
    """Physical VMEM of the local TPU; conservative fallback if unavailable."""
    try:
        return int(pltpu.get_tpu_info().vmem_capacity_bytes)
    except Exception:
        return 64 * 1024 * 1024          # v7x-sized fallback, safe everywhere


def _padded_vmem_bytes(shape, sublane, itemsize):
    """VMEM footprint after (sublane, 128) tiling of the last two dims."""
    if len(shape) < 2:
        return _round_up(int(shape[0]) if shape else 1, 128) * sublane * itemsize
    lead = 1
    for s in shape[:-2]:
        lead *= int(s)
    return (lead * _round_up(int(shape[-2]), sublane)
            * _round_up(int(shape[-1]), 128) * itemsize)


def _estimate_step_vmem_bytes(d, c, t_pad, n_out, h, in_itemsize, t_chunk):
    """Honest per-grid-step VMEM model for a candidate bf_tile = d."""
    sub_in = {4: 8, 2: 16, 1: 32}.get(in_itemsize, 8)
    pb = _padded_vmem_bytes
    x_blk = pb((d, c, t_pad), sub_in, in_itemsize)
    o_blk = pb((d, n_out, t_pad), sub_in, in_itemsize)
    total = 2 * (x_blk + o_blk)                         # double-buffered pipeline
    wts = (pb((c, h), 8, 4) + pb((1, h), 8, 4)
           + pb((n_out, h, c), 8, 4) + pb((n_out, 1, c), 8, 4)
           + pb((n_out, h, 1), 8, 4) + pb((n_out, 1, 1), 8, 4))
    total += 2 * wts                                    # constant weight blocks
    total += pb((d, n_out, c), 8, 4) + pb((d, n_out, 1), 8, 4)   # scratch (1x)
    # in-kernel live temporaries:
    total += 2 * pb((d, n_out, t_pad), 8, 4)            # f32 einsum result + bias add
    total += x_blk                                      # possible MXU-feed copy of x
    total += 3 * pb((d, c, t_chunk), 8, 4)              # chunked-variance working set
    total += 4 * pb((d, c), 8, 4) + 2 * pb((d, h), 8, 4)  # stats / feat / hidden
    return total


def _pick_bf_tile(bf, c, t_pad, n_out, h, in_itemsize, t_chunk, budget):
    """Largest multiple-of-8 BF tile that fits the VMEM budget, capped so the
    grid keeps >= 2 steps when there is enough work (v7x has 2 TensorCores)."""
    bf8 = _round_up(bf, 8)
    best = 8
    cand = 16
    while cand <= bf8 and _estimate_step_vmem_bytes(
            cand, c, t_pad, n_out, h, in_itemsize, t_chunk) <= budget:
        best = cand
        cand += 8
    if bf8 >= 16:
        best = min(best, max(8, (bf8 // 2) // 8 * 8))
    return best


# --------------------------------------------------------------------------
# Fused kernel: log-diag-cov feature + MLP + dynamic spatial filter apply
# --------------------------------------------------------------------------
def _make_dsf_kernel(t_real, t_chunk):
    def kernel(x_ref, w1t_ref, b1_ref, w2w_ref, b2w_ref, w2b_ref, b2b_ref,
               o_ref, w_scr, b_scr):
        # x_ref:   (BT, C, T_pad)  (input dtype, zero-padded time tail)
        # w1t_ref: (C, H)      b1_ref:  (1, H)
        # w2w_ref: (n_out, H, C)  b2w_ref: (n_out, 1, C)
        # w2b_ref: (n_out, H, 1)  b2b_ref: (n_out, 1, 1)
        # o_ref:   (BT, n_out, T_pad)
        # w_scr:   VMEM (BT, n_out, C) f32     b_scr: VMEM (BT, n_out, 1) f32
        bt, c, t_pad = x_ref.shape
        n_out = o_ref.shape[1]

        # --- log_diag_cov feature: unbiased variance over the real T samples.
        # Chunked reduction over the lane (time) axis: no (BT,C,T) f32 copy of
        # x and no materialized x - mean full-block temporary.
        s = jnp.zeros((bt, c, 1), jnp.float32)
        for c0 in range(0, t_pad, t_chunk):
            c1 = min(c0 + t_chunk, t_pad)
            blk = x_ref[:, :, c0:c1].astype(jnp.float32)
            s = s + jnp.sum(blk, axis=-1, keepdims=True)   # zero pad adds 0
        mean = s * jnp.float32(1.0 / t_real)               # (bt, c, 1)

        ss = jnp.zeros((bt, c), jnp.float32)
        for c0 in range(0, t_pad, t_chunk):
            c1 = min(c0 + t_chunk, t_pad)
            blk = x_ref[:, :, c0:c1].astype(jnp.float32)
            d = blk - mean
            if c1 > t_real:            # static: mask the zero-padded time tail
                pos = lax.broadcasted_iota(jnp.int32, d.shape, 2) + c0
                d = jnp.where(pos < t_real, d, 0.0)
            ss = ss + jnp.sum(d * d, axis=-1)
        var = ss * jnp.float32(1.0 / (t_real - 1))          # (bt, c)
        # torch sets -inf (var == 0) entries to 0
        feat = jnp.where(var > 0, jnp.log(var), 0.0)        # (bt, c)

        # --- MLP: Linear -> ReLU (2nd layer folded into the per-o step below)
        h = jnp.dot(feat, w1t_ref[...],
                    preferred_element_type=jnp.float32) + b1_ref[...]
        h = jnp.maximum(h, 0.0)                             # (bt, H)

        # --- per-output-channel filter row + bias: constant-weight leading-dim
        # indexing (free), no lane-slicing of per-step data.
        for o in range(n_out):
            w_scr[:, o, :] = (jnp.dot(h, w2w_ref[o],
                                      preferred_element_type=jnp.float32)
                              + b2w_ref[o])                 # (bt, C)
            b_scr[:, o, :] = (jnp.dot(h, w2b_ref[o],
                                      preferred_element_type=jnp.float32)
                              + b2b_ref[o])                 # (bt, 1)

        # --- apply: out = W @ x + bias (x stays in its input dtype; MXU takes
        # bf16 natively and accumulates f32).
        # NOTE: for very small C a VPU broadcast-MAC over c could replace this
        # K=C-underutilized batched matmul; the kernel is mem-bound so the MXU
        # path has ample slack and is kept for simplicity.
        w_dyn = w_scr[...].astype(x_ref.dtype)
        out = jnp.einsum('boc,bct->bot', w_dyn, x_ref[...],
                         preferred_element_type=jnp.float32)
        out = out + b_scr[...]
        o_ref[...] = out.astype(o_ref.dtype)

    return kernel


# --------------------------------------------------------------------------
# Wrapper
# --------------------------------------------------------------------------
def dynamic_spatial_filter(x, params, n_out_channels, bf_tile=None):
    """x: (B, F, C, T) -> (B, F, n_out_channels, T)  (log_diag_cov DSF)."""
    B, F, C, T = x.shape
    assert T >= 2, "unbiased variance requires at least 2 time samples"
    w1, b1, w2, b2 = params                 # PyTorch nn.Linear layout (out, in)
    H = int(w1.shape[0])
    NO = int(w2.shape[0])
    assert NO == n_out_channels * (C + 1)

    # --- host-side, one-time weight prep ------------------------------------
    w1t = jnp.asarray(w1, jnp.float32).T                          # (C, H)
    b1r = jnp.asarray(b1, jnp.float32).reshape(1, H)              # (1, H)
    w2a = jnp.asarray(w2, jnp.float32)
    b2a = jnp.asarray(b2, jnp.float32)
    # torch split: mlp_out[:, :n_out] -> bias, mlp_out[:, n_out:].view(n_out, C) -> W
    w2b_k = w2a[:n_out_channels].reshape(n_out_channels, H, 1)    # (n_out, H, 1)
    b2b_k = b2a[:n_out_channels].reshape(n_out_channels, 1, 1)    # (n_out, 1, 1)
    w2w_k = jnp.transpose(
        w2a[n_out_channels:].reshape(n_out_channels, C, H), (0, 2, 1))  # (n_out, H, C)
    b2w_k = b2a[n_out_channels:].reshape(n_out_channels, 1, C)    # (n_out, 1, C)

    BF = B * F
    T_pad = _round_up(T, 128)              # lane-aligned input/output slabs
    t_chunk = min(T_pad, 512)

    cap = _vmem_capacity_bytes()
    vmem_limit = int(0.75 * cap)           # ~96 MiB v5e/v6e, ~48 MiB v7x
    if bf_tile is None:
        bf_tile = _pick_bf_tile(BF, C, T_pad, n_out_channels, H,
                                x.dtype.itemsize, t_chunk,
                                budget=vmem_limit - 2 * 1024 * 1024)
    BF_pad = _round_up(BF, bf_tile)

    xf = x.reshape(BF, C, T)
    if BF_pad != BF or T_pad != T:
        # One extra HBM copy of x; buys uniform tiles and unmasked, lane-dense
        # vld/vst on the dominant (bf_tile, *, T_pad) slabs.
        xf = jnp.pad(xf, ((0, BF_pad - BF), (0, 0), (0, T_pad - T)))

    kernel = _make_dsf_kernel(t_real=T, t_chunk=t_chunk)

    out = pl.pallas_call(
        kernel,
        out_shape=jax.ShapeDtypeStruct((BF_pad, n_out_channels, T_pad), x.dtype),
        grid_spec=pltpu.PrefetchScalarGridSpec(
            num_scalar_prefetch=0,
            grid=(BF_pad // bf_tile,),
            in_specs=[
                pl.BlockSpec((bf_tile, C, T_pad), lambda i: (i, 0, 0)),
                # constant (grid-invariant) weights
                pl.BlockSpec((C, H), lambda i: (0, 0)),
                pl.BlockSpec((1, H), lambda i: (0, 0)),
                pl.BlockSpec((n_out_channels, H, C), lambda i: (0, 0, 0)),
                pl.BlockSpec((n_out_channels, 1, C), lambda i: (0, 0, 0)),
                pl.BlockSpec((n_out_channels, H, 1), lambda i: (0, 0, 0)),
                pl.BlockSpec((n_out_channels, 1, 1), lambda i: (0, 0, 0)),
            ],
            out_specs=pl.BlockSpec((bf_tile, n_out_channels, T_pad),
                                   lambda i: (i, 0, 0)),
            scratch_shapes=[
                pltpu.VMEM((bf_tile, n_out_channels, C), jnp.float32),
                pltpu.VMEM((bf_tile, n_out_channels, 1), jnp.float32),
            ],
        ),
        compiler_params=pltpu.CompilerParams(
            dimension_semantics=("parallel",),
            vmem_limit_bytes=vmem_limit,
        ),
    )(xf, w1t, b1r, w2w_k, b2w_k, w2b_k, b2b_k)

    return out[:BF, :, :T].reshape(B, F, n_out_channels, T)


# --------------------------------------------------------------------------
# Pure-JAX reference (mirrors the PyTorch forward) for sanity checking
# --------------------------------------------------------------------------
def dynamic_spatial_filter_ref(x, params, n_out_channels):
    w1, b1, w2, b2 = params
    B, F, C, T = x.shape
    var = jnp.var(x, axis=3, ddof=1)                    # unbiased
    feat = jnp.where(var > 0, jnp.log(var), 0.0)        # (B, F, C)
    h = jax.nn.relu(feat @ w1.T + b1)                   # (B, F, H)
    mlp = h @ w2.T + b2                                 # (B, F, NO)
    W = mlp[:, :, n_out_channels:].reshape(B, F, n_out_channels, C)
    bias = mlp[:, :, :n_out_channels].reshape(B, F, n_out_channels, 1)
    return W @ x + bias


if __name__ == "__main__":
    B, F, C, T = 2, 2, 4, 16
    n_channels = C
    n_inputs = n_channels                  # log_diag_cov -> n_channels features
    n_hidden = int(1 * n_inputs)           # ratio = 1
    n_out_channels = n_channels            # default
    n_outputs = n_out_channels * (n_channels + 1)

    key = jax.random.PRNGKey(0)
    kx, k1, k2, k3, k4 = jax.random.split(key, 5)

    # deterministic synthetic parameters (PyTorch nn.Linear layout: (out, in))
    w1 = jax.random.uniform(k1, (n_hidden, n_inputs), jnp.float32,
                            minval=-1.0, maxval=1.0) / jnp.sqrt(n_inputs)
    b1 = jax.random.uniform(k2, (n_hidden,), jnp.float32,
                            minval=-1.0, maxval=1.0) / jnp.sqrt(n_inputs)
    w2 = jax.random.uniform(k3, (n_outputs, n_hidden), jnp.float32,
                            minval=-1.0, maxval=1.0) / jnp.sqrt(n_hidden)
    b2 = jax.random.uniform(k4, (n_outputs,), jnp.float32,
                            minval=-1.0, maxval=1.0) / jnp.sqrt(n_hidden)
    params = (w1, b1, w2, b2)

    x = jax.random.normal(kx, (B, F, C, T), jnp.float32)

    out = dynamic_spatial_filter(x, params, n_out_channels)
    out = jax.block_until_ready(out)

    ref = dynamic_spatial_filter_ref(x, params, n_out_channels)
    assert out.shape == (B, F, n_out_channels, T), out.shape
    assert jnp.allclose(out, ref, rtol=1e-3, atol=1e-3), (
        float(jnp.max(jnp.abs(out - ref))))

    print("KERNEL_OK")
</pallas_src>

<mosaic_0001>
module attributes {stable_mosaic.version = 11 : i64} {
  func.func @kernel(%arg0: i32, %arg1: memref<8x4x128xf32, #tpu.memory_space<vmem>>, %arg2: memref<4x4xf32, #tpu.memory_space<vmem>>, %arg3: memref<1x4xf32, #tpu.memory_space<vmem>>, %arg4: memref<4x4x4xf32, #tpu.memory_space<vmem>>, %arg5: memref<4x1x4xf32, #tpu.memory_space<vmem>>, %arg6: memref<4x4x1xf32, #tpu.memory_space<vmem>>, %arg7: memref<4x1x1xf32, #tpu.memory_space<vmem>>, %arg8: memref<8x4x128xf32, #tpu.memory_space<vmem>>, %arg9: memref<8x4x4xf32, #tpu.memory_space<vmem>>, %arg10: memref<8x4x1xf32, #tpu.memory_space<vmem>>) attributes {dimension_semantics = [#tpu.dimension_semantics<parallel>], iteration_bounds = array<i64: 1>, scalar_prefetch = 0 : i64, scratch_operands = 2 : i64, tpu.core_type = #tpu.core_type<tc>, window_params = [{transform_indices = @transform_0, window_bounds = array<i64: 8, 4, 128>}, {pipeline_mode = #tpu.pipeline_mode<synchronous>, transform_indices = @transform_1, window_bounds = array<i64: 4, 4>}, {pipeline_mode = #tpu.pipeline_mode<synchronous>, transform_indices = @transform_2, window_bounds = array<i64: 1, 4>}, {pipeline_mode = #tpu.pipeline_mode<synchronous>, transform_indices = @transform_3, window_bounds = array<i64: 4, 4, 4>}, {pipeline_mode = #tpu.pipeline_mode<synchronous>, transform_indices = @transform_4, window_bounds = array<i64: 4, 1, 4>}, {pipeline_mode = #tpu.pipeline_mode<synchronous>, transform_indices = @transform_5, window_bounds = array<i64: 4, 4, 1>}, {pipeline_mode = #tpu.pipeline_mode<synchronous>, transform_indices = @transform_6, window_bounds = array<i64: 4, 1, 1>}, {transform_indices = @transform_7, window_bounds = array<i64: 8, 4, 128>}]} {
    %cst = arith.constant 0.000000e+00 : f32
    %0 = vector.broadcast %cst : f32 to vector<8x4x1xf32>
    %c0 = arith.constant 0 : index
    %c0_0 = arith.constant 0 : index
    %c0_1 = arith.constant 0 : index
    %1 = vector.load %arg1[%c0, %c0_0, %c0_1] : memref<8x4x128xf32, #tpu.memory_space<vmem>>, vector<8x4x128xf32>
    %cst_2 = arith.constant dense<0.000000e+00> : vector<8x4xf32>
    %2 = vector.multi_reduction <add>, %1, %cst_2 [2] : vector<8x4x128xf32> to vector<8x4xf32>
    %3 = vector.shape_cast %2 : vector<8x4xf32> to vector<8x4x1xf32>
    %4 = arith.addf %0, %3 : vector<8x4x1xf32>
    %cst_3 = arith.constant 6.250000e-02 : f32
    %5 = vector.broadcast %cst_3 : f32 to vector<8x4x1xf32>
    %6 = arith.mulf %4, %5 : vector<8x4x1xf32>
    %cst_4 = arith.constant 0.000000e+00 : f32
    %7 = vector.broadcast %cst_4 : f32 to vector<8x4xf32>
    %c0_5 = arith.constant 0 : index
    %c0_6 = arith.constant 0 : index
    %c0_7 = arith.constant 0 : index
    %8 = vector.load %arg1[%c0_5, %c0_6, %c0_7] : memref<8x4x128xf32, #tpu.memory_space<vmem>>, vector<8x4x128xf32>
    %9 = vector.broadcast %6 : vector<8x4x1xf32> to vector<8x4x128xf32>
    %10 = arith.subf %8, %9 : vector<8x4x128xf32>
    %11 = tpu.iota {dimensions = array<i32: 2>} : vector<8x4x128xi32>
    %c0_i32 = arith.constant 0 : i32
    %12 = vector.broadcast %c0_i32 : i32 to vector<8x4x128xi32>
    %13 = arith.addi %11, %12 : vector<8x4x128xi32>
    %c16_i32 = arith.constant 16 : i32
    %14 = vector.broadcast %c16_i32 : i32 to vector<8x4x128xi32>
    %15 = arith.cmpi slt, %13, %14 : vector<8x4x128xi32>
    %cst_8 = arith.constant 0.000000e+00 : f32
    %16 = vector.broadcast %cst_8 : f32 to vector<8x4x128xf32>
    %17 = arith.select %15, %10, %16 : vector<8x4x128xi1>, vector<8x4x128xf32>
    %18 = arith.mulf %17, %17 : vector<8x4x128xf32>
    %cst_9 = arith.constant dense<0.000000e+00> : vector<8x4xf32>
    %19 = vector.multi_reduction <add>, %18, %cst_9 [2] : vector<8x4x128xf32> to vector<8x4xf32>
    %20 = arith.addf %7, %19 : vector<8x4xf32>
    %cst_10 = arith.constant 0.0666666701 : f32
    %21 = vector.broadcast %cst_10 : f32 to vector<8x4xf32>
    %22 = arith.mulf %20, %21 : vector<8x4xf32>
    %cst_11 = arith.constant 0.000000e+00 : f32
    %23 = vector.broadcast %cst_11 : f32 to vector<8x4xf32>
    %24 = arith.cmpf ogt, %22, %23 : vector<8x4xf32>
    %25 = math.log %22 : vector<8x4xf32>
    %cst_12 = arith.constant 0.000000e+00 : f32
    %26 = vector.broadcast %cst_12 : f32 to vector<8x4xf32>
    %27 = arith.select %24, %25, %26 : vector<8x4xi1>, vector<8x4xf32>
    %c0_13 = arith.constant 0 : index
    %c0_14 = arith.constant 0 : index
    %28 = vector.load %arg2[%c0_13, %c0_14] : memref<4x4xf32, #tpu.memory_space<vmem>>, vector<4x4xf32>
    %cst_15 = arith.constant dense<0.000000e+00> : vector<8x4xf32>
    %29 = tpu.matmul %27, %28, %cst_15 {dimension_numbers = #tpu.dot_dimension_numbers<[1], [0], [0], [1], [0, 0, 1, 1], [], []>} : vector<8x4xf32>, vector<4x4xf32>, vector<8x4xf32> -> vector<8x4xf32>
    %c0_16 = arith.constant 0 : index
    %c0_17 = arith.constant 0 : index
    %30 = vector.load %arg3[%c0_16, %c0_17] : memref<1x4xf32, #tpu.memory_space<vmem>>, vector<1x4xf32>
    %31 = vector.broadcast %30 : vector<1x4xf32> to vector<8x4xf32>
    %32 = arith.addf %29, %31 : vector<8x4xf32>
    %cst_18 = arith.constant 0.000000e+00 : f32
    %33 = vector.broadcast %cst_18 : f32 to vector<8x4xf32>
    %34 = arith.maximumf %32, %33 : vector<8x4xf32>
    %c0_19 = arith.constant 0 : index
    %c0_20 = arith.constant 0 : index
    %c0_21 = arith.constant 0 : index
    %35 = vector.load %arg4[%c0_19, %c0_20, %c0_21] : memref<4x4x4xf32, #tpu.memory_space<vmem>>, vector<1x4x4xf32>
    %36 = vector.shape_cast %35 : vector<1x4x4xf32> to vector<4x4xf32>
    %cst_22 = arith.constant dense<0.000000e+00> : vector<8x4xf32>
    %37 = tpu.matmul %34, %36, %cst_22 {dimension_numbers = #tpu.dot_dimension_numbers<[1], [0], [0], [1], [0, 0, 1, 1], [], []>} : vector<8x4xf32>, vector<4x4xf32>, vector<8x4xf32> -> vector<8x4xf32>
    %c0_23 = arith.constant 0 : index
    %c0_24 = arith.constant 0 : index
    %c0_25 = arith.constant 0 : index
    %38 = vector.load %arg5[%c0_23, %c0_24, %c0_25] : memref<4x1x4xf32, #tpu.memory_space<vmem>>, vector<1x1x4xf32>
    %39 = vector.shape_cast %38 : vector<1x1x4xf32> to vector<1x4xf32>
    %40 = vector.broadcast %39 : vector<1x4xf32> to vector<8x4xf32>
    %41 = arith.addf %37, %40 : vector<8x4xf32>
    %c0_26 = arith.constant 0 : index
    %c0_27 = arith.constant 0 : index
    %c0_28 = arith.constant 0 : index
    %42 = vector.load %arg9[%c0_26, %c0_27, %c0_28] : memref<8x4x4xf32, #tpu.memory_space<vmem>>, vector<8x1x4xf32>
    %43 = vector.shape_cast %42 : vector<8x1x4xf32> to vector<8x4xf32>
    %44 = vector.shape_cast %41 : vector<8x4xf32> to vector<8x1x4xf32>
    tpu.vector_store %arg9[%c0_26, %c0_27, %c0_28], %44 {strides = array<i32>} : memref<8x4x4xf32, #tpu.memory_space<vmem>>, vector<8x1x4xf32>,
    %c0_29 = arith.constant 0 : index
    %c0_30 = arith.constant 0 : index
    %c0_31 = arith.constant 0 : index
    %45 = vector.load %arg6[%c0_29, %c0_30, %c0_31] : memref<4x4x1xf32, #tpu.memory_space<vmem>>, vector<1x4x1xf32>
    %46 = vector.shape_cast %45 : vector<1x4x1xf32> to vector<4x1xf32>
    %cst_32 = arith.constant dense<0.000000e+00> : vector<8x1xf32>
    %47 = tpu.matmul %34, %46, %cst_32 {dimension_numbers = #tpu.dot_dimension_numbers<[1], [0], [0], [1], [0, 0, 1, 1], [], []>} : vector<8x4xf32>, vector<4x1xf32>, vector<8x1xf32> -> vector<8x1xf32>
    %c0_33 = arith.constant 0 : index
    %c0_34 = arith.constant 0 : index
    %c0_35 = arith.constant 0 : index
    %48 = vector.load %arg7[%c0_33, %c0_34, %c0_35] : memref<4x1x1xf32, #tpu.memory_space<vmem>>, vector<1x1x1xf32>
    %49 = vector.shape_cast %48 : vector<1x1x1xf32> to vector<1x1xf32>
    %50 = vector.broadcast %49 : vector<1x1xf32> to vector<8x1xf32>
    %51 = arith.addf %47, %50 : vector<8x1xf32>
    %c0_36 = arith.constant 0 : index
    %c0_37 = arith.constant 0 : index
    %c0_38 = arith.constant 0 : index
    %52 = vector.load %arg10[%c0_36, %c0_37, %c0_38] : memref<8x4x1xf32, #tpu.memory_space<vmem>>, vector<8x1x1xf32>
    %53 = vector.shape_cast %52 : vector<8x1x1xf32> to vector<8x1xf32>
    %54 = vector.shape_cast %51 : vector<8x1xf32> to vector<8x1x1xf32>
    tpu.vector_store %arg10[%c0_36, %c0_37, %c0_38], %54 {strides = array<i32>} : memref<8x4x1xf32, #tpu.memory_space<vmem>>, vector<8x1x1xf32>,
    %c1 = arith.constant 1 : index
    %c0_39 = arith.constant 0 : index
    %c0_40 = arith.constant 0 : index
    %55 = vector.load %arg4[%c1, %c0_39, %c0_40] : memref<4x4x4xf32, #tpu.memory_space<vmem>>, vector<1x4x4xf32>
    %56 = vector.shape_cast %55 : vector<1x4x4xf32> to vector<4x4xf32>
    %cst_41 = arith.constant dense<0.000000e+00> : vector<8x4xf32>
    %57 = tpu.matmul %34, %56, %cst_41 {dimension_numbers = #tpu.dot_dimension_numbers<[1], [0], [0], [1], [0, 0, 1, 1], [], []>} : vector<8x4xf32>, vector<4x4xf32>, vector<8x4xf32> -> vector<8x4xf32>
    %c1_42 = arith.constant 1 : index
    %c0_43 = arith.constant 0 : index
    %c0_44 = arith.constant 0 : index
    %58 = vector.load %arg5[%c1_42, %c0_43, %c0_44] : memref<4x1x4xf32, #tpu.memory_space<vmem>>, vector<1x1x4xf32>
    %59 = vector.shape_cast %58 : vector<1x1x4xf32> to vector<1x4xf32>
    %60 = vector.broadcast %59 : vector<1x4xf32> to vector<8x4xf32>
    %61 = arith.addf %57, %60 : vector<8x4xf32>
    %c0_45 = arith.constant 0 : index
    %c1_46 = arith.constant 1 : index
    %c0_47 = arith.constant 0 : index
    %62 = vector.load %arg9[%c0_45, %c1_46, %c0_47] : memref<8x4x4xf32, #tpu.memory_space<vmem>>, vector<8x1x4xf32>
    %63 = vector.shape_cast %62 : vector<8x1x4xf32> to vector<8x4xf32>
    %64 = vector.shape_cast %61 : vector<8x4xf32> to vector<8x1x4xf32>
    tpu.vector_store %arg9[%c0_45, %c1_46, %c0_47], %64 {strides = array<i32>} : memref<8x4x4xf32, #tpu.memory_space<vmem>>, vector<8x1x4xf32>,
    %c1_48 = arith.constant 1 : index
    %c0_49 = arith.constant 0 : index
    %c0_50 = arith.constant 0 : index
    %65 = vector.load %arg6[%c1_48, %c0_49, %c0_50] : memref<4x4x1xf32, #tpu.memory_space<vmem>>, vector<1x4x1xf32>
    %66 = vector.shape_cast %65 : vector<1x4x1xf32> to vector<4x1xf32>
    %cst_51 = arith.constant dense<0.000000e+00> : vector<8x1xf32>
    %67 = tpu.matmul %34, %66, %cst_51 {dimension_numbers = #tpu.dot_dimension_numbers<[1], [0], [0], [1], [0, 0, 1, 1], [], []>} : vector<8x4xf32>, vector<4x1xf32>, vector<8x1xf32> -> vector<8x1xf32>
    %c1_52 = arith.constant 1 : index
    %c0_53 = arith.constant 0 : index
    %c0_54 = arith.constant 0 : index
    %68 = vector.load %arg7[%c1_52, %c0_53, %c0_54] : memref<4x1x1xf32, #tpu.memory_space<vmem>>, vector<1x1x1xf32>
    %69 = vector.shape_cast %68 : vector<1x1x1xf32> to vector<1x1xf32>
    %70 = vector.broadcast %69 : vector<1x1xf32> to vector<8x1xf32>
    %71 = arith.addf %67, %70 : vector<8x1xf32>
    %c0_55 = arith.constant 0 : index
    %c1_56 = arith.constant 1 : index
    %c0_57 = arith.constant 0 : index
    %72 = vector.load %arg10[%c0_55, %c1_56, %c0_57] : memref<8x4x1xf32, #tpu.memory_space<vmem>>, vector<8x1x1xf32>
    %73 = vector.shape_cast %72 : vector<8x1x1xf32> to vector<8x1xf32>
    %74 = vector.shape_cast %71 : vector<8x1xf32> to vector<8x1x1xf32>
    tpu.vector_store %arg10[%c0_55, %c1_56, %c0_57], %74 {strides = array<i32>} : memref<8x4x1xf32, #tpu.memory_space<vmem>>, vector<8x1x1xf32>,
    %c2 = arith.constant 2 : index
    %c0_58 = arith.constant 0 : index
    %c0_59 = arith.constant 0 : index
    %75 = vector.load %arg4[%c2, %c0_58, %c0_59] : memref<4x4x4xf32, #tpu.memory_space<vmem>>, vector<1x4x4xf32>
    %76 = vector.shape_cast %75 : vector<1x4x4xf32> to vector<4x4xf32>
    %cst_60 = arith.constant dense<0.000000e+00> : vector<8x4xf32>
    %77 = tpu.matmul %34, %76, %cst_60 {dimension_numbers = #tpu.dot_dimension_numbers<[1], [0], [0], [1], [0, 0, 1, 1], [], []>} : vector<8x4xf32>, vector<4x4xf32>, vector<8x4xf32> -> vector<8x4xf32>
    %c2_61 = arith.constant 2 : index
    %c0_62 = arith.constant 0 : index
    %c0_63 = arith.constant 0 : index
    %78 = vector.load %arg5[%c2_61, %c0_62, %c0_63] : memref<4x1x4xf32, #tpu.memory_space<vmem>>, vector<1x1x4xf32>
    %79 = vector.shape_cast %78 : vector<1x1x4xf32> to vector<1x4xf32>
    %80 = vector.broadcast %79 : vector<1x4xf32> to vector<8x4xf32>
    %81 = arith.addf %77, %80 : vector<8x4xf32>
    %c0_64 = arith.constant 0 : index
    %c2_65 = arith.constant 2 : index
    %c0_66 = arith.constant 0 : index
    %82 = vector.load %arg9[%c0_64, %c2_65, %c0_66] : memref<8x4x4xf32, #tpu.memory_space<vmem>>, vector<8x1x4xf32>
    %83 = vector.shape_cast %82 : vector<8x1x4xf32> to vector<8x4xf32>
    %84 = vector.shape_cast %81 : vector<8x4xf32> to vector<8x1x4xf32>
    tpu.vector_store %arg9[%c0_64, %c2_65, %c0_66], %84 {strides = array<i32>} : memref<8x4x4xf32, #tpu.memory_space<vmem>>, vector<8x1x4xf32>,
    %c2_67 = arith.constant 2 : index
    %c0_68 = arith.constant 0 : index
    %c0_69 = arith.constant 0 : index
    %85 = vector.load %arg6[%c2_67, %c0_68, %c0_69] : memref<4x4x1xf32, #tpu.memory_space<vmem>>, vector<1x4x1xf32>
    %86 = vector.shape_cast %85 : vector<1x4x1xf32> to vector<4x1xf32>
    %cst_70 = arith.constant dense<0.000000e+00> : vector<8x1xf32>
    %87 = tpu.matmul %34, %86, %cst_70 {dimension_numbers = #tpu.dot_dimension_numbers<[1], [0], [0], [1], [0, 0, 1, 1], [], []>} : vector<8x4xf32>, vector<4x1xf32>, vector<8x1xf32> -> vector<8x1xf32>
    %c2_71 = arith.constant 2 : index
    %c0_72 = arith.constant 0 : index
    %c0_73 = arith.constant 0 : index
    %88 = vector.load %arg7[%c2_71, %c0_72, %c0_73] : memref<4x1x1xf32, #tpu.memory_space<vmem>>, vector<1x1x1xf32>
    %89 = vector.shape_cast %88 : vector<1x1x1xf32> to vector<1x1xf32>
    %90 = vector.broadcast %89 : vector<1x1xf32> to vector<8x1xf32>
    %91 = arith.addf %87, %90 : vector<8x1xf32>
    %c0_74 = arith.constant 0 : index
    %c2_75 = arith.constant 2 : index
    %c0_76 = arith.constant 0 : index
    %92 = vector.load %arg10[%c0_74, %c2_75, %c0_76] : memref<8x4x1xf32, #tpu.memory_space<vmem>>, vector<8x1x1xf32>
    %93 = vector.shape_cast %92 : vector<8x1x1xf32> to vector<8x1xf32>
    %94 = vector.shape_cast %91 : vector<8x1xf32> to vector<8x1x1xf32>
    tpu.vector_store %arg10[%c0_74, %c2_75, %c0_76], %94 {strides = array<i32>} : memref<8x4x1xf32, #tpu.memory_space<vmem>>, vector<8x1x1xf32>,
    %c3 = arith.constant 3 : index
    %c0_77 = arith.constant 0 : index
    %c0_78 = arith.constant 0 : index
    %95 = vector.load %arg4[%c3, %c0_77, %c0_78] : memref<4x4x4xf32, #tpu.memory_space<vmem>>, vector<1x4x4xf32>
    %96 = vector.shape_cast %95 : vector<1x4x4xf32> to vector<4x4xf32>
    %cst_79 = arith.constant dense<0.000000e+00> : vector<8x4xf32>
    %97 = tpu.matmul %34, %96, %cst_79 {dimension_numbers = #tpu.dot_dimension_numbers<[1], [0], [0], [1], [0, 0, 1, 1], [], []>} : vector<8x4xf32>, vector<4x4xf32>, vector<8x4xf32> -> vector<8x4xf32>
    %c3_80 = arith.constant 3 : index
    %c0_81 = arith.constant 0 : index
    %c0_82 = arith.constant 0 : index
    %98 = vector.load %arg5[%c3_80, %c0_81, %c0_82] : memref<4x1x4xf32, #tpu.memory_space<vmem>>, vector<1x1x4xf32>
    %99 = vector.shape_cast %98 : vector<1x1x4xf32> to vector<1x4xf32>
    %100 = vector.broadcast %99 : vector<1x4xf32> to vector<8x4xf32>
    %101 = arith.addf %97, %100 : vector<8x4xf32>
    %c0_83 = arith.constant 0 : index
    %c3_84 = arith.constant 3 : index
    %c0_85 = arith.constant 0 : index
    %102 = vector.load %arg9[%c0_83, %c3_84, %c0_85] : memref<8x4x4xf32, #tpu.memory_space<vmem>>, vector<8x1x4xf32>
    %103 = vector.shape_cast %102 : vector<8x1x4xf32> to vector<8x4xf32>
    %104 = vector.shape_cast %101 : vector<8x4xf32> to vector<8x1x4xf32>
    tpu.vector_store %arg9[%c0_83, %c3_84, %c0_85], %104 {strides = array<i32>} : memref<8x4x4xf32, #tpu.memory_space<vmem>>, vector<8x1x4xf32>,
    %c3_86 = arith.constant 3 : index
    %c0_87 = arith.constant 0 : index
    %c0_88 = arith.constant 0 : index
    %105 = vector.load %arg6[%c3_86, %c0_87, %c0_88] : memref<4x4x1xf32, #tpu.memory_space<vmem>>, vector<1x4x1xf32>
    %106 = vector.shape_cast %105 : vector<1x4x1xf32> to vector<4x1xf32>
    %cst_89 = arith.constant dense<0.000000e+00> : vector<8x1xf32>
    %107 = tpu.matmul %34, %106, %cst_89 {dimension_numbers = #tpu.dot_dimension_numbers<[1], [0], [0], [1], [0, 0, 1, 1], [], []>} : vector<8x4xf32>, vector<4x1xf32>, vector<8x1xf32> -> vector<8x1xf32>
    %c3_90 = arith.constant 3 : index
    %c0_91 = arith.constant 0 : index
    %c0_92 = arith.constant 0 : index
    %108 = vector.load %arg7[%c3_90, %c0_91, %c0_92] : memref<4x1x1xf32, #tpu.memory_space<vmem>>, vector<1x1x1xf32>
    %109 = vector.shape_cast %108 : vector<1x1x1xf32> to vector<1x1xf32>
    %110 = vector.broadcast %109 : vector<1x1xf32> to vector<8x1xf32>
    %111 = arith.addf %107, %110 : vector<8x1xf32>
    %c0_93 = arith.constant 0 : index
    %c3_94 = arith.constant 3 : index
    %c0_95 = arith.constant 0 : index
    %112 = vector.load %arg10[%c0_93, %c3_94, %c0_95] : memref<8x4x1xf32, #tpu.memory_space<vmem>>, vector<8x1x1xf32>
    %113 = vector.shape_cast %112 : vector<8x1x1xf32> to vector<8x1xf32>
    %114 = vector.shape_cast %111 : vector<8x1xf32> to vector<8x1x1xf32>
    tpu.vector_store %arg10[%c0_93, %c3_94, %c0_95], %114 {strides = array<i32>} : memref<8x4x1xf32, #tpu.memory_space<vmem>>, vector<8x1x1xf32>,
    %c0_96 = arith.constant 0 : index
    %c0_97 = arith.constant 0 : index
    %c0_98 = arith.constant 0 : index
    %115 = vector.load %arg9[%c0_96, %c0_97, %c0_98] : memref<8x4x4xf32, #tpu.memory_space<vmem>>, vector<8x4x4xf32>
    %c0_99 = arith.constant 0 : index
    %c0_100 = arith.constant 0 : index
    %c0_101 = arith.constant 0 : index
    %116 = vector.load %arg1[%c0_99, %c0_100, %c0_101] : memref<8x4x128xf32, #tpu.memory_space<vmem>>, vector<8x4x128xf32>
    "tpu.trace_start"() <{level = 10 : i32, message = "boc,bct->bot"}> : () -> ()
    %cst_102 = arith.constant dense<0.000000e+00> : vector<8x4x128xf32>
    %117 = tpu.matmul %115, %116, %cst_102 {dimension_numbers = #tpu.dot_dimension_numbers<[2], [1], [1], [2], [0, 0, 0, 1, 1, 2], [0], [0]>} : vector<8x4x4xf32>, vector<8x4x128xf32>, vector<8x4x128xf32> -> vector<8x4x128xf32>
    "tpu.trace_stop"() : () -> ()
    %c0_103 = arith.constant 0 : index
    %c0_104 = arith.constant 0 : index
    %c0_105 = arith.constant 0 : index
    %118 = vector.load %arg10[%c0_103, %c0_104, %c0_105] : memref<8x4x1xf32, #tpu.memory_space<vmem>>, vector<8x4x1xf32>
    %119 = vector.broadcast %118 : vector<8x4x1xf32> to vector<8x4x128xf32>
    %120 = arith.addf %117, %119 : vector<8x4x128xf32>
    %c0_106 = arith.constant 0 : index
    %c0_107 = arith.constant 0 : index
    %c0_108 = arith.constant 0 : index
    %121 = vector.load %arg8[%c0_106, %c0_107, %c0_108] : memref<8x4x128xf32, #tpu.memory_space<vmem>>, vector<8x4x128xf32>
    tpu.vector_store %arg8[%c0_106, %c0_107, %c0_108], %120 {strides = array<i32>} : memref<8x4x128xf32, #tpu.memory_space<vmem>>, vector<8x4x128xf32>,
    return
  }
  func.func @transform_0(%arg0: i32) -> (i32, i32, i32) {
    %c0_i32 = arith.constant 0 : i32
    %c0_i32_0 = arith.constant 0 : i32
    %c0_i32_1 = arith.constant 0 : i32
    return %arg0, %c0_i32, %c0_i32_0 : i32, i32, i32
  }
  func.func @transform_1(%arg0: i32) -> (i32, i32) {
    %c0_i32 = arith.constant 0 : i32
    %c0_i32_0 = arith.constant 0 : i32
    %c0_i32_1 = arith.constant 0 : i32
    return %c0_i32, %c0_i32_0 : i32, i32
  }
  func.func @transform_2(%arg0: i32) -> (i32, i32) {
    %c0_i32 = arith.constant 0 : i32
    %c0_i32_0 = arith.constant 0 : i32
    %c0_i32_1 = arith.constant 0 : i32
    return %c0_i32, %c0_i32_0 : i32, i32
  }
  func.func @transform_3(%arg0: i32) -> (i32, i32, i32) {
    %c0_i32 = arith.constant 0 : i32
    %c0_i32_0 = arith.constant 0 : i32
    %c0_i32_1 = arith.constant 0 : i32
    %c0_i32_2 = arith.constant 0 : i32
    return %c0_i32, %c0_i32_0, %c0_i32_1 : i32, i32, i32
  }
  func.func @transform_4(%arg0: i32) -> (i32, i32, i32) {
    %c0_i32 = arith.constant 0 : i32
    %c0_i32_0 = arith.constant 0 : i32
    %c0_i32_1 = arith.constant 0 : i32
    %c0_i32_2 = arith.constant 0 : i32
    return %c0_i32, %c0_i32_0, %c0_i32_1 : i32, i32, i32
  }
  func.func @transform_5(%arg0: i32) -> (i32, i32, i32) {
    %c0_i32 = arith.constant 0 : i32
    %c0_i32_0 = arith.constant 0 : i32
    %c0_i32_1 = arith.constant 0 : i32
    %c0_i32_2 = arith.constant 0 : i32
    return %c0_i32, %c0_i32_0, %c0_i32_1 : i32, i32, i32
  }
  func.func @transform_6(%arg0: i32) -> (i32, i32, i32) {
    %c0_i32 = arith.constant 0 : i32
    %c0_i32_0 = arith.constant 0 : i32
    %c0_i32_1 = arith.constant 0 : i32
    %c0_i32_2 = arith.constant 0 : i32
    return %c0_i32, %c0_i32_0, %c0_i32_1 : i32, i32, i32
  }
  func.func @transform_7(%arg0: i32) -> (i32, i32, i32) {
    %c0_i32 = arith.constant 0 : i32
    %c0_i32_0 = arith.constant 0 : i32
    %c0_i32_1 = arith.constant 0 : i32
    return %arg0, %c0_i32, %c0_i32_0 : i32, i32, i32
  }
}

</mosaic_0001>

<bundles_post_ra>
// kernel: tpu_custom_call.1
= control target key start
LH: loop header
LB: loop body
LE: loop exit
PB: predicated region body
PF: predicated region fallthrough
CT: control target
= control target key end

     0   :  { %12 = vsyncpa [#allocation5], 0  ;;  %s2841_s0 = inlined_call_operand.hbm [shape: f32[8,4,128], index: 0, kind: input, shape index: {}]   ;;  %s2842_s1 = inlined_call_operand.vmem [shape: f32[4,4], index: 1, kind: input, shape index: {}]   ;;  %s2843_s2 = inlined_call_operand.vmem [shape: f32[1,4], index: 2, kind: input, shape index: {}]   ;;  %s2844_s3 = inlined_call_operand.vmem [shape: f32[4,4,4], index: 3, kind: input, shape index: {}]   ;;  %s2845_s4 = inlined_call_operand.vmem [shape: f32[4,1,4], index: 4, kind: input, shape index: {}]   ;;  %s2846_s5 = inlined_call_operand.vmem [shape: f32[4,4,1], index: 5, kind: input, shape index: {}]   ;;  %s2847_s6 = inlined_call_operand.vmem [shape: f32[4,1,1], index: 6, kind: input, shape index: {}]   ;;  %s2848_s7 = inlined_call_operand.hbm [shape: f32[8,4,128], index: 7, kind: output, shape index: {}]  }
   0x1   :  { %13 = vsyncpa [#allocation6], 0  ;;  %s2466_s24 = smov [#allocation4]   ;;  %s2418_s28 = scalar_lea.hbm %s2841_s0, 512 }
   0x2   :  { %s19_s25 = sshll.u32 %s2466_s24, 4  ;;  %p2419_p0 = scmp.ne.s32.totalorder %s2841_s0, %s2418_s28  ;;  %s20_s25 = int_to_ptr.vmem [resolvable:$true] %s19_s25 }
   0x3   :  { %p2422_p1 = scmp.lt.u32.totalorder %s2418_s28, %s2841_s0 }
   0x5   :  { %p2424_p2 = pnand %p2422_p1, %p2419_p0 }
   0x7   :  { %2427 = shalt.err (!%p2424_p2)
}
   0x8   :  { %s2428_s10 = scalar_lea.vmem %s20_s25, 512  ;;  %p2433_p4 = scmp.lt.s32.totalorder %s20_s25, %s20_s25 }
   0x9   :  { %p2429_p3 = scmp.ne.s32.totalorder %s20_s25, %s2428_s10  ;;  %p2434_p5 = scmp.lt.s32.totalorder %s2428_s10, %s2428_s10 }
   0xb   :  { %p2435_p6 = por %p2434_p5, %p2433_p4 }
   0xd   :  { %p2436_p7 = pnand %p2435_p6, %p2429_p3 }
   0xf   :  { %2439 = shalt.err (!%p2436_p7)
}
  0x10   :  { %s2467_s11 = smov 64   ;;  %s2468_s12 = smov 4  }
  0x11   :  { %25 = dma.hbm_to_vmem [thread:$0]  %s2841_s0, 512, %s20_s25, [#allocation5], %s2467_s11, %s2467_s11, %s2468_s12  }
  0x12   :  { %2462 = dma.done.wait [#allocation5], 512  }
  0x13   :  { %2463 = vsyncadd [#allocation5], 4294966784  ;;  %vm49_vm0 = vcmask 1043456   ;;  %v41_v0 = vld [vmem:[#allocation4] sm:$0xf]  ;;  %v98_v16 = vlaneseq  ;;  %vm2470_vm2 = vmmov 0  }
  0x14   :  { %v43_v1 = vld [vmem:[#allocation4 + $0x8] sm:$0xf]  ;;  %v42_v2 = vld [vmem:[#allocation4 + $0x4] sm:$0xf]  ;;  %v50_v3 = vsel %vm49_vm0, %v41_v0, 0.0  ;;  %vm237_vm5 = vcmask 1041409  }
  0x15   :  { %v56_v4 = vsel %vm49_vm0, %v43_v1, 0.0  ;;  %v44_v5 = vld [vmem:[#allocation4 + $0xc] sm:$0xf]  ;;  %51 = vadd.xlane.f32.xlu0 %v50_v3  ;;  %v53_v6 = vsel %vm49_vm0, %v42_v2, 0.0  ;;  %v45_v8 = vld [vmem:[#allocation4 + $0x10] sm:$0xf] }
  0x16   :  { %57 = vadd.xlane.f32.xlu1 %v56_v4  ;;  %v59_v7 = vsel %vm49_vm0, %v44_v5, 0.0  ;;  %v46_v9 = vld [vmem:[#allocation4 + $0x14] sm:$0xf]  ;;  %v62_v10 = vsel %vm49_vm0, %v45_v8, 0.0  ;;  %v47_v12 = vld [vmem:[#allocation4 + $0x18] sm:$0xf] }
  0x17   :  { %v65_v11 = vsel %vm49_vm0, %v46_v9, 0.0  ;;  %v48_v13 = vld [vmem:[#allocation4 + $0x1c] sm:$0xf]  ;;  %v68_v14 = vsel %vm49_vm0, %v47_v12, 0.0  ;;  %v99_v17 = vand.u32 127, %v98_v16  ;;  %v2537_v18 = vshrl.u32 %v98_v16, 7 }
  0x18   :  { %v71_v15 = vsel %vm49_vm0, %v48_v13, 0.0  ;;  %v189_v4 = vld [vmem:[%s2842_s1] sm:$0xf]  ;;  %vm239_vm7 = vcmask 1042434   ;;  %vm241_vm9 = vcmask 1043459   ;;  %vm243_vm11 = vcmask 1044484  }
  0x19   :  { %54 = vadd.xlane.f32.xlu0 %v53_v6  ;;  %v2540_v19 = vsub.s32 %v99_v17, %v2537_v18  ;;  %vm100_vm1 = vcmp.lt.s32.totalorder %v99_v17, 16  ;;  %vm245_vm14 = vcmask 1045509  }
  0x1a   :  { %60 = vadd.xlane.f32.xlu1 %v59_v7 }
  0x1d   :  { %63 = vadd.xlane.f32.xlu0 %v62_v10 }
  0x1e   :  { %66 = vadd.xlane.f32.xlu1 %v65_v11 }
  0x21   :  { %69 = vadd.xlane.f32.xlu0 %v68_v14 }
  0x22   :  { %72 = vadd.xlane.f32.xlu1 %v71_v15 }
  0xa2   :  { %v52_v20 = vpop.xlane.xlu0 %51 }
  0xa3   :  { %v58_v21 = vpop.xlane.xlu1 %57  ;;  %v82_v22 = vmul.f32 0.0625, %v52_v20 }
  0xa4   :  { %v84_v23 = vmul.f32 0.0625, %v58_v21 }
  0xa5   :  { %v90_v24 = vsub.f32 %v41_v0, %v82_v22 }
  0xa6   :  { %v92_v25 = vsub.f32 %v43_v1, %v84_v23  ;;  %v55_v26 = vpop.xlane.xlu0 %54 }
  0xa7   :  { %v61_v27 = vpop.xlane.xlu1 %60  ;;  %v83_v28 = vmul.f32 0.0625, %v55_v26  ;;  %v101_v30 = vsel %vm100_vm1, %v90_v24, 0.0 }
  0xa8   :  { %v85_v29 = vmul.f32 0.0625, %v61_v27  ;;  %v103_v31 = vsel %vm100_vm1, %v92_v25, 0.0  ;;  %v109_v32 = vmul.f32 %v101_v30, %v101_v30 }
  0xa9   :  { %v111_v33 = vmul.f32 %v103_v31, %v103_v31  ;;  %v91_v34 = vsub.f32 %v42_v2, %v83_v28 }
  0xaa   :  { %v93_v35 = vsub.f32 %v44_v5, %v85_v29  ;;  %v64_v36 = vpop.xlane.xlu0 %63  ;;  %v117_v37 = vsel %vm49_vm0, %v109_v32, 0.0  ;;  %v2469_v5 = vmov 0.0  }
  0xab   :  { %v67_v38 = vpop.xlane.xlu1 %66  ;;  %v86_v39 = vmul.f32 0.0625, %v64_v36  ;;  %118 = vadd.xlane.f32.xlu0 %v117_v37  ;;  %v102_v41 = vsel %vm100_vm1, %v91_v34, 0.0  ;;  %v123_v43 = vsel %vm49_vm0, %v111_v33, 0.0  ;;  %2307 = vmatprep.subr.mxu0 %v2469_v5 }
  0xac   :  { %v87_v40 = vmul.f32 0.0625, %v67_v38  ;;  %v104_v42 = vsel %vm100_vm1, %v93_v35, 0.0  ;;  %v110_v44 = vmul.f32 %v102_v41, %v102_v41  ;;  %2309 = vmatprep.mubr.msk.f32.mxu0 %vm2470_vm2, %v2469_v5  ;;  %2308 = vmatpush3.msk.msra.mxu0 %vm49_vm0, %v189_v4 }
  0xad   :  { %v112_v45 = vmul.f32 %v104_v42, %v104_v42  ;;  %v94_v46 = vsub.f32 %v45_v8, %v86_v39  ;;  %2312 = vmatprep.subr.mxu1 %v2469_v5  ;;  %2317 = vmatprep.subr.mxu0 %v2469_v5 }
  0xae   :  { %v95_v47 = vsub.f32 %v46_v9, %v87_v40  ;;  %v70_v48 = vpop.xlane.xlu0 %69  ;;  %v120_v49 = vsel %vm49_vm0, %v110_v44, 0.0  ;;  %2314 = vmatprep.mubr.msk.f32.mxu1 %vm2470_vm2, %v2469_v5 }
  0xaf   :  { %v73_v50 = vpop.xlane.xlu1 %72  ;;  %v88_v51 = vmul.f32 0.0625, %v70_v48  ;;  %124 = vadd.xlane.f32.xlu0 %v123_v43  ;;  %121 = vadd.xlane.f32.xlu1 %v120_v49  ;;  %v105_v53 = vsel %vm100_vm1, %v94_v46, 0.0  ;;  %v126_v55 = vsel %vm49_vm0, %v112_v45, 0.0 }
  0xb0   :  { %v89_v52 = vmul.f32 0.0625, %v73_v50  ;;  %v106_v54 = vsel %vm100_vm1, %v95_v47, 0.0  ;;  %v113_v56 = vmul.f32 %v105_v53, %v105_v53 }
  0xb1   :  { %v114_v57 = vmul.f32 %v106_v54, %v106_v54  ;;  %v96_v58 = vsub.f32 %v47_v12, %v88_v51 }
  0xb2   :  { %v97_v59 = vsub.f32 %v48_v13, %v89_v52  ;;  %v129_v60 = vsel %vm49_vm0, %v113_v56, 0.0 }
  0xb3   :  { %127 = vadd.xlane.f32.xlu1 %v126_v55  ;;  %130 = vadd.xlane.f32.xlu0 %v129_v60  ;;  %v107_v61 = vsel %vm100_vm1, %v96_v58, 0.0  ;;  %v132_v63 = vsel %vm49_vm0, %v114_v57, 0.0 }
  0xb4   :  { %v108_v62 = vsel %vm100_vm1, %v97_v59, 0.0  ;;  %v115_v0 = vmul.f32 %v107_v61, %v107_v61  ;;  %vm247_vm1 = vcmask 1046534  }
  0xb5   :  { %v116_v1 = vmul.f32 %v108_v62, %v108_v62 }
  0xb6   :  { %v135_v2 = vsel %vm49_vm0, %v115_v0, 0.0  ;;  %v479_v0 = vld [vmem:[%s2846_s5] sm:$0xf] }
  0xb7   :  { %133 = vadd.xlane.f32.xlu1 %v132_v63  ;;  %136 = vadd.xlane.f32.xlu0 %v135_v2  ;;  %v138_v3 = vsel %vm49_vm0, %v116_v1, 0.0  ;;  %v328_v63 = vld [vmem:[%s2844_s3] sm:$0xf] }
  0xb8   :  { %2313 = vmatpush3.msk.msra.mxu1 %vm49_vm0, %v328_v63 }
  0xb9   :  { %2322 = vmatprep.subr.mxu1 %v2469_v5 }
  0xbb   :  { %139 = vadd.xlane.f32.xlu1 %v138_v3 }
 0x138   :  { %v119_v6 = vpop.xlane.xlu0 %118 }
 0x139   :  { %v149_v7 = vmul.f32 0.06666667, %v119_v6  ;;  %v2227_v6 = vld [vmem:[%s2844_s3 + $0x4] sm:$0xf] }
 0x13b   :  { %2402 = vlog2.f32 %v149_v7  ;;  %vm157_vm3 = vcmp.gt.f32.partialorder %v149_v7, 0.0  ;;  %v2232_v7 = vld [vmem:[%s2846_s5 + $0x4] sm:$0xf] }
 0x13c   :  { %v122_v8 = vpop.xlane.xlu1 %121  ;;  %v125_v9 = vpop.xlane.xlu0 %124 }
 0x13d   :  { %v150_v10 = vmul.f32 0.06666667, %v122_v8  ;;  %v151_v11 = vmul.f32 0.06666667, %v125_v9  ;;  %v2237_v8 = vld [vmem:[%s2844_s3 + $0x8] sm:$0xf] }
 0x13e   :  { %v2242_v9 = vld [vmem:[%s2846_s5 + $0x8] sm:$0xf] }
 0x13f   :  { %2404 = vlog2.f32 %v150_v10  ;;  %vm158_vm4 = vcmp.gt.f32.partialorder %v150_v10, 0.0  ;;  %vm159_vm6 = vcmp.gt.f32.partialorder %v151_v11, 0.0  ;;  %v2247_v10 = vld [vmem:[%s2844_s3 + $0xc] sm:$0xf] }
 0x140   :  { %2406 = vlog2.f32 %v151_v11  ;;  %v128_v12 = vpop.xlane.xlu1 %127  ;;  %v131_v13 = vpop.xlane.xlu0 %130  ;;  %v2252_v11 = vld [vmem:[%s2846_s5 + $0xc] sm:$0xf] }
 0x141   :  { %v152_v14 = vmul.f32 0.06666667, %v128_v12  ;;  %v153_v15 = vmul.f32 0.06666667, %v131_v13  ;;  %v1529_v12 = vld [vmem:[#allocation4] sm:$0xf] }
 0x142   :  { %v1530_v13 = vld [vmem:[#allocation4 + $0x4] sm:$0xf] }
 0x143   :  { %2408 = vlog2.f32 %v152_v14  ;;  %vm160_vm8 = vcmp.gt.f32.partialorder %v152_v14, 0.0  ;;  %vm161_vm10 = vcmp.gt.f32.partialorder %v153_v15, 0.0  ;;  %v2471_v14 = vmov 0  }
 0x144   :  { %2410 = vlog2.f32 %v153_v15  ;;  %v134_v16 = vpop.xlane.xlu1 %133  ;;  %v137_v17 = vpop.xlane.xlu0 %136  ;;  %2400 = vset.pattern.permute.xlu0 %v2471_v14  ;;  %2401 = vset.pattern.permute.xlu1 %v2471_v14  ;;  %v2472_v15 = vmov 1966171168  }
 0x145   :  { %v2403_v20 = vpop.eup %2402  ;;  %v154_v21 = vmul.f32 0.06666667, %v134_v16  ;;  %v155_v22 = vmul.f32 0.06666667, %v137_v17  ;;  %v415_v16 = vunpack.c.l.s4 %v2472_v15 }
 0x146   :  { %v166_v23 = vmul.f32 0.6931472, %v2403_v20  ;;  %v2221_v20 = vld [vmem:[%s2845_s4] ss:$0 sm:$0xff] }
 0x147   :  { %2412 = vlog2.f32 %v154_v21  ;;  %vm162_vm12 = vcmp.gt.f32.partialorder %v154_v21, 0.0  ;;  %vm163_vm13 = vcmp.gt.f32.partialorder %v155_v22, 0.0  ;;  %v416_v17 = vunpack.c.0.s8 %v415_v16  ;;  %v2224_v21 = vld [vmem:[%s2847_s6] ss:$0 sm:$0xff] }
 0x148   :  { %2414 = vlog2.f32 %v155_v22  ;;  %v140_v24 = vpop.xlane.xlu1 %139  ;;  %v181_v28 = vsel %vm157_vm3, %v166_v23, 0.0  ;;  %vm249_vm3 = vcmask 1047559  }
 0x149   :  { %v2405_v25 = vpop.eup %2404  ;;  %v156_v26 = vmul.f32 0.06666667, %v140_v24  ;;  %v208_v33 = vrot.slane %v181_v28, %v2540_v19  ;;  %v2658_v22 = vsub.s32 %v416_v17, %v2537_v18  ;;  %v2234_v18 = vld [vmem:[%s2847_s6 + $0x1] ss:$0 sm:$0xff] }
 0x14a   :  { %v2407_v27 = vpop.eup %2406  ;;  %v168_v29 = vmul.f32 0.6931472, %v2405_v25 }
 0x14b   :  { %v170_v30 = vmul.f32 0.6931472, %v2407_v27  ;;  %2416 = vlog2.f32 %v156_v26  ;;  %vm164_vm15 = vcmp.gt.f32.partialorder %v156_v26, 0.0 }
 0x14c   :  { %v182_v31 = vsel %vm158_vm4, %v168_v29, 0.0  ;;  %vm251_vm4 = vcmask 31744  }
 0x14d   :  { %v2409_v32 = vpop.eup %2408  ;;  %v212_v34 = vrot.slane %v182_v31, %v2540_v19  ;;  %v183_v35 = vsel %vm159_vm6, %v170_v30, 0.0  ;;  %vm618_vm6 = vcmask 0  }
 0x14e   :  { %v2411_v36 = vpop.eup %2410  ;;  %v216_v37 = vrot.slane %v183_v35, %v2540_v19  ;;  %v172_v38 = vmul.f32 0.6931472, %v2409_v32 }
 0x14f   :  { %v238_v39 = vsel %vm237_vm5, %v212_v34, %v208_v33  ;;  %v174_v40 = vmul.f32 0.6931472, %v2411_v36  ;;  %v2229_v33 = vld [vmem:[%s2845_s4 + $0x1] ss:$0 sm:$0xff]  ;;  %vm470_vm5 = vcmask 24576  }
 0x150   :  { %v184_v41 = vsel %vm160_vm8, %v172_v38, 0.0  ;;  %v240_v46 = vsel %vm239_vm7, %v216_v37, %v238_v39 }
 0x151   :  { %v2413_v42 = vpop.eup %2412  ;;  %v220_v43 = vrot.slane %v184_v41, %v2540_v19  ;;  %v185_v44 = vsel %vm161_vm10, %v174_v40, 0.0 }
 0x152   :  { %v2415_v45 = vpop.eup %2414  ;;  %v224_v47 = vrot.slane %v185_v44, %v2540_v19  ;;  %v176_v48 = vmul.f32 0.6931472, %v2413_v42 }
 0x153   :  { %v242_v49 = vsel %vm241_vm9, %v220_v43, %v240_v46  ;;  %v178_v50 = vmul.f32 0.6931472, %v2415_v45 }
 0x154   :  { %v186_v51 = vsel %vm162_vm12, %v176_v48, 0.0  ;;  %v244_v55 = vsel %vm243_vm11, %v224_v47, %v242_v49 }
 0x155   :  { %v2417_v52 = vpop.eup %2416  ;;  %v228_v53 = vrot.slane %v186_v51, %v2540_v19  ;;  %v187_v54 = vsel %vm163_vm13, %v178_v50, 0.0 }
 0x156   :  { %v232_v56 = vrot.slane %v187_v54, %v2540_v19  ;;  %v180_v57 = vmul.f32 0.6931472, %v2417_v52 }
 0x157   :  { %v246_v58 = vsel %vm245_vm14, %v228_v53, %v244_v55 }
 0x158   :  { %v188_v59 = vsel %vm164_vm15, %v180_v57, 0.0  ;;  %v248_v61 = vsel %vm247_vm1, %v232_v56, %v246_v58 }
 0x159   :  { %v236_v60 = vrot.slane %v188_v59, %v2540_v19  ;;  %v2218_v19 = vld [vmem:[%s2843_s2] ss:$0 sm:$0xff] }
 0x15b   :  { %v250_v62 = vsel %vm249_vm3, %v236_v60, %v248_v61  ;;  %v2239_v60 = vld [vmem:[%s2845_s4 + $0x2] ss:$0 sm:$0xff] }
 0x15c   :  { %2310 = vmatmul.mubr.msk.f32.vlgmr.msra.gmra.mrb[0].mxu0 %vm251_vm4, %v250_v62 }
 0x15d   :  { %2319 = vmatprep.mubr.msk.f32.mxu0 %vm2470_vm2, %v2469_v5  ;;  %2318 = vmatpush3.msk.msra.mxu0 %vm49_vm0, %v479_v0 }
 0x15e   :  { %2327 = vmatprep.subr.mxu0 %v2469_v5 }
 0x22f   :  { %v323_v1 = vpop.f32.mrb[0].mxu0 }
 0x230   :  { %v324_v2 = vadd.f32 %v2218_v19, %v323_v1  ;;  %v2311_v3 = vpop.f32.mrb[1].mxu0 }
 0x232   :  { %v327_v4 = vmax.f32 %v324_v2, 0.0 }
 0x234   :  { %2315 = vmatmul.mubr.msk.f32.vlgmr.msra.gmra.mrb[0].mxu1 %vm251_vm4, %v327_v4  ;;  %2320 = vmatmul.mubr.msk.f32.vlgmr.msra.gmra.mrb[2].mxu0 %vm251_vm4, %v327_v4 }
 0x235   :  { %2323 = vmatpush3.msk.msra.mxu1 %vm49_vm0, %v2227_v6  ;;  %2324 = vmatprep.mubr.msk.f32.mxu1 %vm2470_vm2, %v2469_v5 }
 0x236   :  { %2328 = vmatpush3.msk.msra.mxu0 %vm49_vm0, %v2232_v7  ;;  %2329 = vmatprep.mubr.msk.f32.mxu0 %vm2470_vm2, %v2469_v5 }
 0x237   :  { %2332 = vmatprep.subr.mxu1 %v2469_v5  ;;  %2337 = vmatprep.subr.mxu0 %v2469_v5 }
 0x238   :  { %2325 = vmatmul.mubr.msk.f32.vlgmr.msra.gmra.mrb[2].mxu1 %vm251_vm4, %v327_v4  ;;  %2330 = vmatmul.mubr.msk.f32.vlgmr.msra.gmra.mrb[4].mxu0 %vm251_vm4, %v327_v4 }
 0x239   :  { %2333 = vmatpush3.msk.msra.mxu1 %vm49_vm0, %v2237_v8  ;;  %2334 = vmatprep.mubr.msk.f32.mxu1 %vm2470_vm2, %v2469_v5 }
 0x23a   :  { %2338 = vmatpush3.msk.msra.mxu0 %vm49_vm0, %v2242_v9  ;;  %2339 = vmatprep.mubr.msk.f32.mxu0 %vm2470_vm2, %v2469_v5 }
 0x23b   :  { %2342 = vmatprep.subr.mxu1 %v2469_v5  ;;  %2347 = vmatprep.subr.mxu0 %v2469_v5 }
 0x23c   :  { %2335 = vmatmul.mubr.msk.f32.vlgmr.msra.gmra.mrb[4].mxu1 %vm251_vm4, %v327_v4  ;;  %2340 = vmatmul.mubr.msk.f32.vlgmr.msra.gmra.mrb[6].mxu0 %vm251_vm4, %v327_v4 }
 0x23d   :  { %2343 = vmatpush3.msk.msra.mxu1 %vm49_vm0, %v2247_v10  ;;  %2344 = vmatprep.mubr.msk.f32.mxu1 %vm2470_vm2, %v2469_v5 }
 0x23e   :  { %2348 = vmatpush3.msk.msra.mxu0 %vm49_vm0, %v2252_v11  ;;  %2349 = vmatprep.mubr.msk.f32.mxu0 %vm2470_vm2, %v2469_v5 }
 0x23f   :  { %2352 = vmatprep.subr.mxu1 %v2469_v5  ;;  %2357 = vmatprep.subr.mxu0 %v2469_v5 }
 0x240   :  { %2345 = vmatmul.mubr.msk.f32.vlgmr.msra.gmra.mrb[6].mxu1 %vm251_vm4, %v327_v4  ;;  %2350 = vmatmul.mubr.msk.f32.vlgmr.msra.gmra.mrb[8].mxu0 %vm251_vm4, %v327_v4 }
 0x241   :  { %2354 = vmatprep.mubr.msk.f32.mxu1 %vm2470_vm2, %v2469_v5  ;;  %2359 = vmatprep.mubr.msk.f32.mxu0 %vm2470_vm2, %v2469_v5 }
 0x242   :  { %2353 = vmatpush3.msk.msra.mxu1 %vm49_vm0, %v1529_v12  ;;  %2358 = vmatpush3.msk.msra.mxu0 %vm49_vm0, %v1530_v13 }
 0x243   :  { %2362 = vmatprep.subr.mxu1 %v2469_v5  ;;  %2367 = vmatprep.subr.mxu0 %v2469_v5 }
 0x307   :  { %v408_v23 = vpop.f32.mrb[0].mxu1  ;;  %v556_v24 = vpop.f32.mrb[2].mxu0 }
 0x308   :  { %v409_v25 = vadd.f32 %v2221_v20, %v408_v23  ;;  %v557_v26 = vadd.f32 %v2224_v21, %v556_v24  ;;  %v2316_v27 = vpop.f32.mrb[1].mxu1  ;;  %v2321_v28 = vpop.f32.mrb[3].mxu0 }
 0x30a   :  { %v413_v29 = vcombine.high %v409_v25, %v409_v25  ;;  %v420_v30 = vrot.slane %v409_v25, %v2658_v22  ;;  %v561_v31 = vcombine.high %v557_v26, %v557_v26  ;;  %v568_v32 = vrot.slane %v557_v26, %v2658_v22 }
 0x30b   :  { %v706_v34 = vpop.f32.mrb[2].mxu1  ;;  %v855_v35 = vpop.f32.mrb[4].mxu0 }
 0x30c   :  { %v427_v36 = vrot.slane %v413_v29, %v2658_v22  ;;  %v428_v37 = vcombine.high %v420_v30, %v420_v30  ;;  %v436_v38 = vrot.slane %v420_v30, %v2658_v22  ;;  %v575_v39 = vrot.slane %v561_v31, %v2658_v22  ;;  %v2326_v40 = vpop.f32.mrb[3].mxu1  ;;  %v2331_v41 = vpop.f32.mrb[5].mxu0  ;;  %v2244_v30 = vld [vmem:[%s2847_s6 + $0x2] ss:$0 sm:$0xff] }
 0x30d   :  { %v576_v42 = vcombine.high %v568_v32, %v568_v32  ;;  %v584_v43 = vrot.slane %v568_v32, %v2658_v22  ;;  %v707_v44 = vadd.f32 %v2229_v33, %v706_v34  ;;  %v856_v45 = vadd.f32 %v2234_v18, %v855_v35  ;;  %v2249_v34 = vld [vmem:[%s2845_s4 + $0x3] ss:$0 sm:$0xff] }
 0x30e   :  { %v429_v46 = vcombine.high %v427_v36, %v427_v36  ;;  %v443_v47 = vrot.slane %v427_v36, %v2658_v22  ;;  %v450_v48 = vrot.slane %v428_v37, %v2658_v22  ;;  %v458_v49 = vcombine.high %v436_v38, %v436_v38  ;;  %471 = vst.msk [vmem:[#allocation2] sm:$0x1] %vm470_vm5, %v436_v38 }
 0x30f   :  { %v577_v50 = vcombine.high %v575_v39, %v575_v39  ;;  %v591_v51 = vrot.slane %v575_v39, %v2658_v22  ;;  %v598_v52 = vrot.slane %v576_v42, %v2658_v22  ;;  %v606_v53 = vcombine.high %v584_v43, %v584_v43  ;;  %619 = vst.msk [vmem:[#allocation3] sm:$0x1] %vm618_vm6, %v584_v43  ;;  %v1004_v54 = vpop.f32.mrb[4].mxu1  ;;  %v2678_v55 = vpop.f32.mrb[6].mxu0 }
 0x310   :  { %v457_v56 = vrot.slane %v429_v46, %v2658_v22  ;;  %v459_v57 = vcombine.high %v443_v47, %v443_v47  ;;  %v460_v58 = vcombine.high %v450_v48, %v450_v48  ;;  %472 = vst.msk [vmem:[#allocation2 + $0x4] sm:$0x1] %vm470_vm5, %v450_v48  ;;  %473 = vst.msk [vmem:[#allocation2 + $0x8] sm:$0x1] %vm470_vm5, %v458_v49  ;;  %v2336_v61 = vpop.f32.mrb[5].mxu1  ;;  %v2341_v62 = vpop.f32.mrb[7].mxu0 }
 0x311   :  { %475 = vst.msk [vmem:[#allocation2 + $0x10] sm:$0x1] %vm470_vm5, %v443_v47  ;;  %v711_v59 = vcombine.high %v707_v44, %v707_v44  ;;  %v605_v63 = vrot.slane %v577_v50, %v2658_v22  ;;  %v607_v0 = vcombine.high %v591_v51, %v591_v51  ;;  %v608_v19 = vcombine.high %v598_v52, %v598_v52 }
 0x312   :  { %620 = vst.msk [vmem:[#allocation3 + $0x4] sm:$0x1] %vm618_vm6, %v598_v52  ;;  %621 = vst.msk [vmem:[#allocation3 + $0x8] sm:$0x1] %vm618_vm6, %v606_v53  ;;  %v718_v1 = vrot.slane %v707_v44, %v2658_v22  ;;  %v461_v2 = vcombine.high %v457_v56, %v457_v56  ;;  %v860_v4 = vcombine.high %v856_v45, %v856_v45 }
 0x313   :  { %623 = vst.msk [vmem:[#allocation3 + $0x10] sm:$0x1] %vm618_vm6, %v591_v51  ;;  %v725_v3 = vrot.slane %v711_v59, %v2658_v22  ;;  %v867_v6 = vrot.slane %v856_v45, %v2658_v22  ;;  %v609_v7 = vcombine.high %v605_v63, %v605_v63  ;;  %622 = vst.msk [vmem:[#allocation3 + $0xc] sm:$0x1] %vm618_vm6, %v608_v19  ;;  %v1302_v11 = vpop.f32.mrb[6].mxu1  ;;  %v2701_v12 = vpop.f32.mrb[8].mxu0 }
 0x314   :  { %474 = vst.msk [vmem:[#allocation2 + $0xc] sm:$0x1] %vm470_vm5, %v460_v58  ;;  %476 = vst.msk [vmem:[#allocation2 + $0x14] sm:$0x1] %vm470_vm5, %v457_v56  ;;  %v726_v8 = vcombine.high %v718_v1, %v718_v1  ;;  %v734_v9 = vrot.slane %v718_v1, %v2658_v22  ;;  %v1005_v10 = vadd.f32 %v2239_v60, %v1004_v54  ;;  %v2346_v17 = vpop.f32.mrb[7].mxu1  ;;  %v2351_v20 = vpop.f32.mrb[9].mxu0 }
 0x315   :  { %477 = vst.msk [vmem:[#allocation2 + $0x18] sm:$0x1] %vm470_vm5, %v459_v57  ;;  %478 = vst.msk [vmem:[#allocation2 + $0x1c] sm:$0x1] %vm470_vm5, %v461_v2  ;;  %v727_v13 = vcombine.high %v725_v3, %v725_v3  ;;  %v741_v14 = vrot.slane %v725_v3, %v2658_v22  ;;  %v874_v15 = vrot.slane %v860_v4, %v2658_v22 }
 0x316   :  { %624 = vst.msk [vmem:[#allocation3 + $0x14] sm:$0x1] %vm618_vm6, %v605_v63  ;;  %625 = vst.msk [vmem:[#allocation3 + $0x18] sm:$0x1] %vm618_vm6, %v607_v0  ;;  %v875_v16 = vcombine.high %v867_v6, %v867_v6  ;;  %v748_v21 = vrot.slane %v726_v8, %v2658_v22  ;;  %v756_v23 = vcombine.high %v734_v9, %v734_v9  ;;  %v2254_v63 = vld [vmem:[%s2847_s6 + $0x3] ss:$0 sm:$0xff] }
 0x317   :  { %626 = vst.msk [vmem:[#allocation3 + $0x1c] sm:$0x1] %vm618_vm6, %v609_v7  ;;  %v883_v24 = vrot.slane %v867_v6, %v2658_v22  ;;  %v1009_v25 = vcombine.high %v1005_v10, %v1005_v10  ;;  %v755_v26 = vrot.slane %v727_v13, %v2658_v22  ;;  %v757_v27 = vcombine.high %v741_v14, %v741_v14  ;;  %s2473_s6 = smov [#allocation7]  }
 0x318   :  { %768 = vst.msk [vmem:[#allocation2 + $0x1] sm:$0x1] %vm470_vm5, %v734_v9  ;;  %772 = vst.msk [vmem:[#allocation2 + $0x11] sm:$0x1] %vm470_vm5, %v741_v14  ;;  %v876_v28 = vcombine.high %v874_v15, %v874_v15  ;;  %v890_v29 = vrot.slane %v874_v15, %v2658_v22  ;;  %v758_v31 = vcombine.high %v748_v21, %v748_v21  ;;  %s2206_s22 = sshll.u32 %s2473_s6, 4  ;;  %s2207_s22 = int_to_ptr.vmem [resolvable:$true] %s2206_s22 }
 0x319   :  { %769 = vst.msk [vmem:[#allocation2 + $0x5] sm:$0x1] %vm470_vm5, %v748_v21  ;;  %770 = vst.msk [vmem:[#allocation2 + $0x9] sm:$0x1] %vm470_vm5, %v756_v23  ;;  %v897_v32 = vrot.slane %v875_v16, %v2658_v22  ;;  %v905_v33 = vcombine.high %v883_v24, %v883_v24  ;;  %v1016_v18 = vrot.slane %v1005_v10, %v2658_v22  ;;  %s2440_s23 = scalar_lea.vmem %s2207_s22, 512  ;;  %p2445_p9 = scmp.lt.s32.totalorder %s2207_s22, %s2207_s22 }
 0x31a   :  { %917 = vst.msk [vmem:[#allocation3 + $0x1] sm:$0x1] %vm618_vm6, %v883_v24  ;;  %v759_v35 = vcombine.high %v755_v26, %v755_v26  ;;  %v904_v36 = vrot.slane %v876_v28, %v2658_v22  ;;  %v906_v37 = vcombine.high %v890_v29, %v890_v29  ;;  %921 = vst.msk [vmem:[#allocation3 + $0x11] sm:$0x1] %vm618_vm6, %v890_v29  ;;  %p2441_p8 = scmp.ne.s32.totalorder %s2207_s22, %s2440_s23  ;;  %p2446_p10 = scmp.lt.s32.totalorder %s2440_s23, %s2440_s23 }
 0x31b   :  { %773 = vst.msk [vmem:[#allocation2 + $0x15] sm:$0x1] %vm470_vm5, %v755_v26  ;;  %774 = vst.msk [vmem:[#allocation2 + $0x19] sm:$0x1] %vm470_vm5, %v757_v27  ;;  %v1023_v38 = vrot.slane %v1009_v25, %v2658_v22  ;;  %v907_v39 = vcombine.high %v897_v32, %v897_v32  ;;  %v1024_v40 = vcombine.high %v1016_v18, %v1016_v18  ;;  %v1531_v25 = vld [vmem:[#allocation4 + $0x8] sm:$0xf] }
 0x31c   :  { %771 = vst.msk [vmem:[#allocation2 + $0xd] sm:$0x1] %vm470_vm5, %v758_v31  ;;  %v1032_v41 = vrot.slane %v1016_v18, %v2658_v22  ;;  %v1154_v42 = vadd.f32 %v2244_v30, %v2678_v55  ;;  %775 = vst.msk [vmem:[#allocation2 + $0x1d] sm:$0x1] %vm470_vm5, %v759_v35  ;;  %v908_v43 = vcombine.high %v904_v36, %v904_v36  ;;  %v1532_v31 = vld [vmem:[#allocation4 + $0xc] sm:$0xf]  ;;  %p2447_p11 = por %p2446_p10, %p2445_p9 }
 0x31d   :  { %918 = vst.msk [vmem:[#allocation3 + $0x5] sm:$0x1] %vm618_vm6, %v897_v32  ;;  %919 = vst.msk [vmem:[#allocation3 + $0x9] sm:$0x1] %vm618_vm6, %v905_v33  ;;  %v1025_v44 = vcombine.high %v1023_v38, %v1023_v38  ;;  %v1039_v45 = vrot.slane %v1023_v38, %v2658_v22  ;;  %v1303_v46 = vadd.f32 %v2249_v34, %v1302_v11  ;;  %v1533_v35 = vld [vmem:[#allocation4 + $0x10] sm:$0xf] }
 0x31e   :  { %922 = vst.msk [vmem:[#allocation3 + $0x15] sm:$0x1] %vm618_vm6, %v904_v36  ;;  %923 = vst.msk [vmem:[#allocation3 + $0x19] sm:$0x1] %vm618_vm6, %v906_v37  ;;  %v1046_v47 = vrot.slane %v1024_v40, %v2658_v22  ;;  %v1054_v48 = vcombine.high %v1032_v41, %v1032_v41  ;;  %v1158_v49 = vcombine.high %v1154_v42, %v1154_v42  ;;  %v1534_v37 = vld [vmem:[#allocation4 + $0x14] sm:$0xf]  ;;  %p2448_p12 = pnand %p2447_p11, %p2441_p8 }
 0x31f   :  { %920 = vst.msk [vmem:[#allocation3 + $0xd] sm:$0x1] %vm618_vm6, %v907_v39  ;;  %v1165_v50 = vrot.slane %v1154_v42, %v2658_v22  ;;  %924 = vst.msk [vmem:[#allocation3 + $0x1d] sm:$0x1] %vm618_vm6, %v908_v43  ;;  %v1053_v51 = vrot.slane %v1025_v44, %v2658_v22  ;;  %v1055_v52 = vcombine.high %v1039_v45, %v1039_v45  ;;  %v1536_v43 = vld [vmem:[#allocation4 + $0x1c] sm:$0xf] }
 0x320   :  { %1066 = vst.msk [vmem:[#allocation2 + $0x2] sm:$0x1] %vm470_vm5, %v1032_v41  ;;  %1070 = vst.msk [vmem:[#allocation2 + $0x12] sm:$0x1] %vm470_vm5, %v1039_v45  ;;  %v1307_v53 = vcombine.high %v1303_v46, %v1303_v46  ;;  %v1314_v54 = vrot.slane %v1303_v46, %v2658_v22  ;;  %v1056_v55 = vcombine.high %v1046_v47, %v1046_v47  ;;  %v1535_v41 = vld [vmem:[#allocation4 + $0x18] sm:$0xf] }
 0x321   :  { %1067 = vst.msk [vmem:[#allocation2 + $0x6] sm:$0x1] %vm470_vm5, %v1046_v47  ;;  %1068 = vst.msk [vmem:[#allocation2 + $0xa] sm:$0x1] %vm470_vm5, %v1054_v48  ;;  %v1172_v56 = vrot.slane %v1158_v49, %v2658_v22  ;;  %v1173_v57 = vcombine.high %v1165_v50, %v1165_v50  ;;  %v1181_v58 = vrot.slane %v1165_v50, %v2658_v22 }
 0x322   :  { %v1057_v59 = vcombine.high %v1053_v51, %v1053_v51  ;;  %1071 = vst.msk [vmem:[#allocation2 + $0x16] sm:$0x1] %vm470_vm5, %v1053_v51  ;;  %1072 = vst.msk [vmem:[#allocation2 + $0x1a] sm:$0x1] %vm470_vm5, %v1055_v52  ;;  %v1321_v60 = vrot.slane %v1307_v53, %v2658_v22  ;;  %v1322_v61 = vcombine.high %v1314_v54, %v1314_v54 }
 0x323   :  { %v1330_v62 = vrot.slane %v1314_v54, %v2658_v22  ;;  %1069 = vst.msk [vmem:[#allocation2 + $0xe] sm:$0x1] %vm470_vm5, %v1056_v55  ;;  %v1174_v0 = vcombine.high %v1172_v56, %v1172_v56  ;;  %v1188_v19 = vrot.slane %v1172_v56, %v2658_v22  ;;  %v1195_v1 = vrot.slane %v1173_v57, %v2658_v22 }
 0x324   :  { %v1203_v2 = vcombine.high %v1181_v58, %v1181_v58  ;;  %1215 = vst.msk [vmem:[#allocation3 + $0x2] sm:$0x1] %vm618_vm6, %v1181_v58  ;;  %v1323_v3 = vcombine.high %v1321_v60, %v1321_v60  ;;  %v1337_v4 = vrot.slane %v1321_v60, %v2658_v22  ;;  %v1344_v6 = vrot.slane %v1322_v61, %v2658_v22 }
 0x325   :  { %1073 = vst.msk [vmem:[#allocation2 + $0x1e] sm:$0x1] %vm470_vm5, %v1057_v59  ;;  %v1352_v7 = vcombine.high %v1330_v62, %v1330_v62  ;;  %1364 = vst.msk [vmem:[#allocation2 + $0x3] sm:$0x1] %vm470_vm5, %v1330_v62  ;;  %v1202_v8 = vrot.slane %v1174_v0, %v2658_v22  ;;  %v1204_v9 = vcombine.high %v1188_v19, %v1188_v19 }
 0x326   :  { %v1205_v10 = vcombine.high %v1195_v1, %v1195_v1  ;;  %1216 = vst.msk [vmem:[#allocation3 + $0x6] sm:$0x1] %vm618_vm6, %v1195_v1  ;;  %1217 = vst.msk [vmem:[#allocation3 + $0xa] sm:$0x1] %vm618_vm6, %v1203_v2  ;;  %v1452_v11 = vadd.f32 %v2254_v63, %v2701_v12  ;;  %v1351_v13 = vrot.slane %v1323_v3, %v2658_v22 }
 0x327   :  { %1219 = vst.msk [vmem:[#allocation3 + $0x12] sm:$0x1] %vm618_vm6, %v1188_v19  ;;  %v1353_v14 = vcombine.high %v1337_v4, %v1337_v4  ;;  %v1354_v15 = vcombine.high %v1344_v6, %v1344_v6  ;;  %v1206_v16 = vcombine.high %v1202_v8, %v1202_v8  ;;  %1220 = vst.msk [vmem:[#allocation3 + $0x16] sm:$0x1] %vm618_vm6, %v1202_v8 }
 0x328   :  { %1365 = vst.msk [vmem:[#allocation2 + $0x7] sm:$0x1] %vm470_vm5, %v1344_v6  ;;  %1366 = vst.msk [vmem:[#allocation2 + $0xb] sm:$0x1] %vm470_vm5, %v1352_v7  ;;  %v1456_v17 = vcombine.high %v1452_v11, %v1452_v11  ;;  %v1463_v12 = vrot.slane %v1452_v11, %v2658_v22  ;;  %v1355_v20 = vcombine.high %v1351_v13, %v1351_v13 }
 0x329   :  { %1368 = vst.msk [vmem:[#allocation2 + $0x13] sm:$0x1] %vm470_vm5, %v1337_v4  ;;  %1367 = vst.msk [vmem:[#allocation2 + $0xf] sm:$0x1] %vm470_vm5, %v1354_v15 }
 0x32a   :  { %1218 = vst.msk [vmem:[#allocation3 + $0xe] sm:$0x1] %vm618_vm6, %v1205_v10  ;;  %1221 = vst.msk [vmem:[#allocation3 + $0x1a] sm:$0x1] %vm618_vm6, %v1204_v9  ;;  %v1470_v21 = vrot.slane %v1456_v17, %v2658_v22  ;;  %v1471_v23 = vcombine.high %v1463_v12, %v1463_v12  ;;  %v1479_v24 = vrot.slane %v1463_v12, %v2658_v22 }
 0x32b   :  { %1369 = vst.msk [vmem:[#allocation2 + $0x17] sm:$0x1] %vm470_vm5, %v1351_v13  ;;  %1370 = vst.msk [vmem:[#allocation2 + $0x1b] sm:$0x1] %vm470_vm5, %v1353_v14 }
 0x32c   :  { %1222 = vst.msk [vmem:[#allocation3 + $0x1e] sm:$0x1] %vm618_vm6, %v1206_v16  ;;  %v1472_v26 = vcombine.high %v1470_v21, %v1470_v21  ;;  %v1486_v27 = vrot.slane %v1470_v21, %v2658_v22  ;;  %v1493_v28 = vrot.slane %v1471_v23, %v2658_v22  ;;  %v1501_v29 = vcombine.high %v1479_v24, %v1479_v24  ;;  %v1521_v30 = vld [vmem:[#allocation2] sm:$0xf] }
 0x32d   :  { %1371 = vst.msk [vmem:[#allocation2 + $0x1f] sm:$0x1] %vm470_vm5, %v1355_v20  ;;  %2355 = vmatmul.mubr.msk.f32.vlgmr.msra.gmra.mrb[8].mxu1 %vm251_vm4, %v1521_v30 }
 0x32e   :  { %1513 = vst.msk [vmem:[#allocation3 + $0x3] sm:$0x1] %vm618_vm6, %v1479_v24  ;;  %v1500_v32 = vrot.slane %v1472_v26, %v2658_v22  ;;  %v1502_v33 = vcombine.high %v1486_v27, %v1486_v27  ;;  %v1503_v18 = vcombine.high %v1493_v28, %v1493_v28  ;;  %1514 = vst.msk [vmem:[#allocation3 + $0x7] sm:$0x1] %vm618_vm6, %v1493_v28  ;;  %2363 = vmatpush3.msk.msra.mxu1 %vm49_vm0, %v1531_v25 }
 0x32f   :  { %1515 = vst.msk [vmem:[#allocation3 + $0xb] sm:$0x1] %vm618_vm6, %v1501_v29  ;;  %1517 = vst.msk [vmem:[#allocation3 + $0x13] sm:$0x1] %vm618_vm6, %v1486_v27  ;;  %v1522_v34 = vld [vmem:[#allocation2 + $0x4] sm:$0xf]  ;;  %2364 = vmatprep.mubr.msk.f32.mxu1 %vm2470_vm2, %v2469_v5  ;;  %2372 = vmatprep.subr.mxu1 %v2469_v5 }
 0x330   :  { %2360 = vmatmul.mubr.msk.f32.vlgmr.msra.gmra.mrb[10].mxu0 %vm251_vm4, %v1522_v34  ;;  %v1504_v22 = vcombine.high %v1500_v32, %v1500_v32  ;;  %1516 = vst.msk [vmem:[#allocation3 + $0xf] sm:$0x1] %vm618_vm6, %v1503_v18  ;;  %1518 = vst.msk [vmem:[#allocation3 + $0x17] sm:$0x1] %vm618_vm6, %v1500_v32  ;;  %v1523_v36 = vld [vmem:[#allocation2 + $0x8] sm:$0xf] }
 0x331   :  { %1519 = vst.msk [vmem:[#allocation3 + $0x1b] sm:$0x1] %vm618_vm6, %v1502_v33  ;;  %2368 = vmatpush3.msk.msra.mxu0 %vm49_vm0, %v1532_v31  ;;  %2369 = vmatprep.mubr.msk.f32.mxu0 %vm2470_vm2, %v2469_v5  ;;  %v1524_v38 = vld [vmem:[#allocation2 + $0xc] sm:$0xf]  ;;  %v1525_v40 = vld [vmem:[#allocation2 + $0x10] sm:$0xf] }
 0x332   :  { %2365 = vmatmul.mubr.msk.f32.vlgmr.msra.gmra.mrb[10].mxu1 %vm251_vm4, %v1523_v36  ;;  %2377 = vmatprep.subr.mxu0 %v2469_v5  ;;  %1520 = vst.msk [vmem:[#allocation3 + $0x1f] sm:$0x1] %vm618_vm6, %v1504_v22  ;;  %v1526_v44 = vld [vmem:[#allocation2 + $0x14] sm:$0xf]  ;;  %v1527_v45 = vld [vmem:[#allocation2 + $0x18] sm:$0xf] }
 0x333   :  { %2373 = vmatpush3.msk.msra.mxu1 %vm49_vm0, %v1533_v35  ;;  %2374 = vmatprep.mubr.msk.f32.mxu1 %vm2470_vm2, %v2469_v5 }
 0x334   :  { %2370 = vmatmul.mubr.msk.f32.vlgmr.msra.gmra.mrb[12].mxu0 %vm251_vm4, %v1524_v38  ;;  %2382 = vmatprep.subr.mxu1 %v2469_v5  ;;  %v1528_v47 = vld [vmem:[#allocation2 + $0x1c] sm:$0xf] }
 0x335   :  { %v1537_v39 = vld [vmem:[#allocation3] sm:$0xf]  ;;  %2378 = vmatpush3.msk.msra.mxu0 %vm49_vm0, %v1534_v37  ;;  %v1538_v42 = vld [vmem:[#allocation3 + $0x4] sm:$0xf]  ;;  %2379 = vmatprep.mubr.msk.f32.mxu0 %vm2470_vm2, %v2469_v5 }
 0x336   :  { %1547 = vperm.xlu0 %2400, %v1537_v39   ;;  %2375 = vmatmul.mubr.msk.f32.vlgmr.msra.gmra.mrb[12].mxu1 %vm251_vm4, %v1525_v40  ;;  %v1539_v46 = vld [vmem:[#allocation3 + $0x8] sm:$0xf]  ;;  %v1541_v48 = vld [vmem:[#allocation3 + $0x10] sm:$0xf] }
 0x337   :  { %1552 = vperm.xlu1 %2401, %v1538_v42   ;;  %2387 = vmatprep.subr.mxu0 %v2469_v5  ;;  %v1540_v49 = vld [vmem:[#allocation3 + $0xc] sm:$0xf]  ;;  %v1542_v50 = vld [vmem:[#allocation3 + $0x14] sm:$0xf] }
 0x338   :  { %2380 = vmatmul.mubr.msk.f32.vlgmr.msra.gmra.mrb[14].mxu0 %vm251_vm4, %v1526_v44  ;;  %2383 = vmatpush3.msk.msra.mxu1 %vm49_vm0, %v1535_v41  ;;  %v1543_v51 = vld [vmem:[#allocation3 + $0x18] sm:$0xf] }
 0x339   :  { %2388 = vmatpush3.msk.msra.mxu0 %vm49_vm0, %v1536_v43  ;;  %2384 = vmatprep.mubr.msk.f32.mxu1 %vm2470_vm2, %v2469_v5  ;;  %v1544_v52 = vld [vmem:[#allocation3 + $0x1c] sm:$0xf] }
 0x33a   :  { %2385 = vmatmul.mubr.msk.f32.vlgmr.msra.gmra.mrb[14].mxu1 %vm251_vm4, %v1527_v45  ;;  %2389 = vmatprep.mubr.msk.f32.mxu0 %vm2470_vm2, %v2469_v5 }
 0x33b   :  { %1557 = vperm.xlu1 %2401, %v1539_v46  }
 0x33c   :  { %2390 = vmatmul.mubr.msk.f32.vlgmr.msra.gmra.mrb[16].mxu0 %vm251_vm4, %v1528_v47 }
 0x33f   :  { %1567 = vperm.xlu1 %2401, %v1541_v48  }
 0x343   :  { %1562 = vperm.xlu1 %2401, %v1540_v49  }
 0x347   :  { %1572 = vperm.xlu1 %2401, %v1542_v50  }
 0x34b   :  { %1577 = vperm.xlu1 %2401, %v1543_v51  }
 0x34f   :  { %1582 = vperm.xlu1 %2401, %v1544_v52  }
 0x3b5   :  { %v1548_v57 = vpop.permute.xlu0 %1547 }
 0x3b6   :  { %v1553_v53 = vpop.permute.xlu1 %1552 }
 0x3ba   :  { %v1558_v54 = vpop.permute.xlu1 %1557 }
 0x3be   :  { %v1568_v55 = vpop.permute.xlu1 %1567 }
 0x3c2   :  { %v1563_v56 = vpop.permute.xlu1 %1562 }
 0x3c6   :  { %v1573_v60 = vpop.permute.xlu1 %1572 }
 0x3ca   :  { %v1578_v6 = vpop.permute.xlu1 %1577 }
 0x3ce   :  { %v1583_v17 = vpop.permute.xlu1 %1582 }
 0x400   :  { %v1657_v5 = vpop.f32.mrb[8].mxu1 }
 0x401   :  { %v1658_v58 = vadd.f32 %v1657_v5, %v1548_v57  ;;  %v2356_v59 = vpop.f32.mrb[9].mxu1 }
 0x403   :  { %v1733_v61 = vpop.f32.mrb[10].mxu0  ;;  %2193 = vst [vmem:[#allocation7] sm:$0xf] %v1658_v58 }
 0x404   :  { %v1734_v62 = vadd.f32 %v1733_v61, %v1553_v53  ;;  %v2361_v63 = vpop.f32.mrb[11].mxu0 }
 0x405   :  { %v1809_v0 = vpop.f32.mrb[10].mxu1 }
 0x406   :  { %2194 = vst [vmem:[#allocation7 + $0x4] sm:$0xf] %v1734_v62  ;;  %v1810_v19 = vadd.f32 %v1809_v0, %v1558_v54  ;;  %v2366_v1 = vpop.f32.mrb[11].mxu1 }
 0x407   :  { %v1885_v2 = vpop.f32.mrb[12].mxu0 }
 0x408   :  { %2195 = vst [vmem:[#allocation7 + $0x8] sm:$0xf] %v1810_v19  ;;  %v1886_v3 = vadd.f32 %v1885_v2, %v1563_v56  ;;  %v2371_v4 = vpop.f32.mrb[13].mxu0 }
 0x409   :  { %v1961_v7 = vpop.f32.mrb[12].mxu1 }
 0x40a   :  { %2196 = vst [vmem:[#allocation7 + $0xc] sm:$0xf] %v1886_v3  ;;  %v1962_v8 = vadd.f32 %v1961_v7, %v1568_v55  ;;  %v2376_v9 = vpop.f32.mrb[13].mxu1 }
 0x40b   :  { %v2037_v10 = vpop.f32.mrb[14].mxu0 }
 0x40c   :  { %2197 = vst [vmem:[#allocation7 + $0x10] sm:$0xf] %v1962_v8  ;;  %v2038_v11 = vadd.f32 %v2037_v10, %v1573_v60  ;;  %v2381_v13 = vpop.f32.mrb[15].mxu0 }
 0x40d   :  { %v2113_v14 = vpop.f32.mrb[14].mxu1 }
 0x40e   :  { %2198 = vst [vmem:[#allocation7 + $0x14] sm:$0xf] %v2038_v11  ;;  %v2114_v15 = vadd.f32 %v2113_v14, %v1578_v6  ;;  %v2386_v16 = vpop.f32.mrb[15].mxu1 }
 0x40f   :  { %v2189_v12 = vpop.f32.mrb[16].mxu0 }
 0x410   :  { %2199 = vst [vmem:[#allocation7 + $0x18] sm:$0xf] %v2114_v15  ;;  %v2190_v20 = vadd.f32 %v2189_v12, %v1583_v17  ;;  %v2391_v21 = vpop.f32.mrb[17].mxu0 }
 0x412   :  { %2200 = vst [vmem:[#allocation7 + $0x1c] sm:$0xf] %v2190_v20 }
 0x413   :  { %2451 = shalt.err (!%p2448_p12)
}
 0x414   :  { %s2452_s25 = scalar_lea.hbm %s2848_s7, 512 }
 0x415   :  { %p2453_p13 = scmp.ne.s32.totalorder %s2848_s7, %s2452_s25  ;;  %p2456_p0 = scmp.lt.u32.totalorder %s2452_s25, %s2848_s7 }
 0x417   :  { %p2458_p1 = pnand %p2456_p0, %p2453_p13 }
 0x419   :  { %2461 = shalt.err (!%p2458_p1)
}
 0x41a   :  { %2212 = dma.vmem_to_hbm [thread:$0]  %s2207_s22, 512, %s2848_s7, [#allocation6], %s2467_s11, %s2467_s11, %s2468_s12  }
 0x41b   :  { %2464 = dma.done.wait [#allocation6], 512  }
 0x41c   :  { %2465 = vsyncadd [#allocation6], 4294966784 }
 0x41d   :  { %2216 = vsyncpa [#allocation5], 1 }
 0x41e   :  { %2217 = vsyncpa [#allocation6], 1 }

</bundles_post_ra>
